<compile_context>
chip_gen: v7x
topology: tpu7x:2x2x1
jax: 0.10.0
libtpu: 0.0.40
codegen_flags: <defaults>
</compile_context>

<pallas_src>
import functools

import numpy as np
import jax
import jax.numpy as jnp
from jax import lax
from jax.experimental import pallas as pl
from jax.experimental.pallas import tpu as pltpu


def _scadacos_tile_kernel(w_ref, x_ref, lbl_ref, loss_ref, *,
                          k_sub, ck_real, exp_dtype):
    """One batch tile: (bt, E) @ (E, CKp) on the MXU (s already folded into W),
    stable logsumexp loss with the label-derived subcluster mask, per-sample
    losses written to the tile's output block."""
    logits = jnp.dot(x_ref[...], w_ref[...],
                     preferred_element_type=jnp.float32)          # (bt, CKp) f32

    bt, ckp = logits.shape
    col = lax.broadcasted_iota(jnp.int32, (bt, ckp), 1)

    # Mask layout-padding columns (zero W columns) so they never reach the
    # softmax denominator.
    if ckp > ck_real:
        logits = jnp.where(col < ck_real, logits, jnp.float32(-1e30))

    m = jnp.max(logits, axis=1, keepdims=True)                    # (bt, 1)
    e = jnp.exp((logits - m).astype(exp_dtype)).astype(jnp.float32)
    denom = jnp.sum(e, axis=1, keepdims=True)                     # (bt, 1)

    lbl = lbl_ref[...]                                            # (bt, 1) int32
    lo = lbl * k_sub
    in_class = (col >= lo) & (col < lo + k_sub)                   # true-class subclusters
    num = jnp.sum(jnp.where(in_class, e, 0.0), axis=1, keepdims=True)

    # loss_b = log(sum_all exp(z)) - log(sum_{true-class subclusters} exp(z))
    per_sample = jnp.log(denom) - jnp.log(jnp.maximum(num, 1e-30))
    # Padded rows (label == -1) contribute zero.
    loss_ref[...] = jnp.where(lbl >= 0, per_sample, 0.0)


def scadacos_forward(x, W, y, s, *, n_classes, n_subclusters,
                     block_b=256, matmul_dtype=jnp.bfloat16,
                     exp_dtype=jnp.float32, reduction="mean"):
    """x: (B, E) f32, W: (E, C*K) f32, y: (B, C) one-hot f32, s: scalar.
    exp_dtype=jnp.bfloat16 is recommended on v6e/v7x (keep f32 on v5e)."""
    x = jnp.asarray(x, jnp.float32)
    W = jnp.asarray(W, jnp.float32)
    y = jnp.asarray(y, jnp.float32)
    B, E = x.shape
    CK = n_classes * n_subclusters
    assert W.shape == (E, CK) and y.shape == (B, n_classes)

    # ---- hoisted preprocessing (single fused XLA pass, batch-independent for W) ----
    # F.normalize(W, dim=0), fold scale s, cast to MXU dtype.
    w_sumsq = jnp.sum(W * W, axis=0, keepdims=True)
    wn = (W * lax.rsqrt(jnp.maximum(w_sumsq, 1e-24)) * s).astype(matmul_dtype)
    # F.normalize(x, dim=1), cast to MXU dtype.
    x_sumsq = jnp.sum(x * x, axis=1, keepdims=True)
    xn = (x * lax.rsqrt(jnp.maximum(x_sumsq, 1e-24))).astype(matmul_dtype)
    # int32 labels; all-zero one-hot rows -> -1 sentinel (contribute zero loss).
    labels = jnp.where(jnp.sum(y, axis=1) > 0.0,
                       jnp.argmax(y, axis=1).astype(jnp.int32),
                       jnp.int32(-1)).reshape(B, 1)

    # ---- layout padding: lane dims to multiples of 128 ----
    e_pad = (-E) % 128
    ck_pad = (-CK) % 128
    if e_pad:
        xn = jnp.pad(xn, ((0, 0), (0, e_pad)))
        wn = jnp.pad(wn, ((0, e_pad), (0, 0)))
    if ck_pad:
        wn = jnp.pad(wn, ((0, 0), (0, ck_pad)))
    E_p, CK_p = E + e_pad, CK + ck_pad

    # ---- batch tiling (multiple of 16 rows for bf16 sublane packing) ----
    if B <= block_b:
        bt, nb, b_pad = B, 1, 0
    else:
        bt = max(16, (block_b // 16) * 16)
        nb = -(-B // bt)
        b_pad = nb * bt - B
    if b_pad:
        xn = jnp.pad(xn, ((0, b_pad), (0, 0)))
        labels = jnp.pad(labels, ((0, b_pad), (0, 0)), constant_values=-1)
    Bp = B + b_pad

    # ---- VMEM budget (resident W assumed double-buffered; intermediates f32) ----
    itm = jnp.dtype(matmul_dtype).itemsize
    vmem_need = (2 * E_p * CK_p * itm        # resident W (worst case 2 buffers)
                 + 2 * bt * E_p * itm        # x tile, double-buffered
                 + 4 * bt * 4                # labels + per-sample output
                 + 6 * bt * CK_p * 4)        # logits / exp / mask intermediates
    vmem_limit = int(min(max(2 * vmem_need, 32 * 1024 * 1024), 64 * 1024 * 1024))

    kernel = functools.partial(_scadacos_tile_kernel,
                               k_sub=n_subclusters, ck_real=CK,
                               exp_dtype=exp_dtype)

    per_sample = pl.pallas_call(
        kernel,
        out_shape=jax.ShapeDtypeStruct((Bp, 1), jnp.float32),
        grid=(nb,),
        in_specs=[
            pl.BlockSpec((E_p, CK_p), lambda i: (0, 0)),   # W_n * s, resident across grid
            pl.BlockSpec((bt, E_p), lambda i: (i, 0)),     # normalized x batch tile (bf16)
            pl.BlockSpec((bt, 1), lambda i: (i, 0)),       # int32 labels tile
        ],
        out_specs=pl.BlockSpec((bt, 1), lambda i: (i, 0)),  # disjoint per-tile losses
        compiler_params=pltpu.CompilerParams(
            dimension_semantics=("parallel",),
            vmem_limit_bytes=vmem_limit),
    )(wn, xn, labels)

    per_sample = per_sample[:B, 0]
    if reduction == "mean":
        return jnp.sum(per_sample) / B
    elif reduction == "sum":
        return jnp.sum(per_sample)
    elif reduction == "none":
        return per_sample
    else:
        raise NotImplementedError(reduction)


def _reference(x, W, y, s, n_classes, n_subclusters):
    """Pure-JAX reference of the PyTorch forward (per-sample losses)."""
    xn = x / jnp.maximum(jnp.linalg.norm(x, axis=1, keepdims=True), 1e-12)
    wn = W / jnp.maximum(jnp.linalg.norm(W, axis=0, keepdims=True), 1e-12)
    logits = (xn @ wn) * s
    prob = jax.nn.softmax(logits, axis=1)
    prob = prob.reshape(-1, n_classes, n_subclusters).sum(axis=2)
    return jnp.sum(-jnp.log(prob) * y, axis=-1)


if __name__ == "__main__":
    # Small shapes consistent with the module's forward.  (Toy size: validates
    # correctness only — benchmark/tune block_b at production B/E/CK.)
    B, E, C, K = 20, 32, 8, 2
    key = jax.random.PRNGKey(0)
    kx, kw, ky = jax.random.split(key, 3)

    x = jax.random.normal(kx, (B, E), dtype=jnp.float32)

    # Deterministic xavier-uniform init for W (embed_size, n_classes * n_subclusters).
    fan_in, fan_out = E, C * K
    limit = float(np.sqrt(6.0 / (fan_in + fan_out)))
    W = jax.random.uniform(kw, (E, C * K), minval=-limit, maxval=limit, dtype=jnp.float32)

    lbl = jax.random.randint(ky, (B,), 0, C)
    y = jax.nn.one_hot(lbl, C, dtype=jnp.float32)

    s_init = float(np.sqrt(2.0) * np.log(C * K - 1))

    ref_per = _reference(x, W, y, s_init, C, K)
    ref_mean = float(jnp.mean(ref_per))

    # 1) f32-MXU path, single tile: tight check of the kernel math.
    loss_f32 = jax.block_until_ready(
        scadacos_forward(x, W, y, s_init, n_classes=C, n_subclusters=K,
                         matmul_dtype=jnp.float32))
    assert np.allclose(float(loss_f32), ref_mean, rtol=1e-4, atol=1e-4), (loss_f32, ref_mean)

    # 2) f32-MXU path, multi-tile (grid of 2 tiles + row padding), reduction='none'.
    per = jax.block_until_ready(
        scadacos_forward(x, W, y, s_init, n_classes=C, n_subclusters=K,
                         matmul_dtype=jnp.float32, block_b=16, reduction="none"))
    assert per.shape == (B,)
    assert np.allclose(np.asarray(per), np.asarray(ref_per), rtol=1e-4, atol=1e-4)

    # 3) Default bf16-MXU production path (looser tolerance for bf16 operands).
    loss_bf16 = jax.block_until_ready(
        scadacos_forward(x, W, y, s_init, n_classes=C, n_subclusters=K, block_b=16))
    assert np.allclose(float(loss_bf16), ref_mean, rtol=3e-2, atol=3e-2), (loss_bf16, ref_mean)

    print("KERNEL_OK")
</pallas_src>

<mosaic_0001>
module attributes {stable_mosaic.version = 11 : i64} {
  func.func @_scadacos_tile_kernel(%arg0: i32, %arg1: memref<128x128xf32, #tpu.memory_space<vmem>>, %arg2: memref<20x128xf32, #tpu.memory_space<vmem>>, %arg3: memref<20x1xi32, #tpu.memory_space<vmem>>, %arg4: memref<20x1xf32, #tpu.memory_space<vmem>>) attributes {dimension_semantics = [#tpu.dimension_semantics<parallel>], iteration_bounds = array<i64: 1>, scalar_prefetch = 0 : i64, scratch_operands = 0 : i64, tpu.core_type = #tpu.core_type<tc>, window_params = [{pipeline_mode = #tpu.pipeline_mode<synchronous>, transform_indices = @transform_0, window_bounds = array<i64: 128, 128>}, {transform_indices = @transform_1, window_bounds = array<i64: 20, 128>}, {transform_indices = @transform_2, window_bounds = array<i64: 20, 1>}, {transform_indices = @transform_3, window_bounds = array<i64: 20, 1>}]} {
    %c0 = arith.constant 0 : index
    %c0_0 = arith.constant 0 : index
    %0 = vector.load %arg2[%c0, %c0_0] : memref<20x128xf32, #tpu.memory_space<vmem>>, vector<20x128xf32>
    %c0_1 = arith.constant 0 : index
    %c0_2 = arith.constant 0 : index
    %1 = vector.load %arg1[%c0_1, %c0_2] : memref<128x128xf32, #tpu.memory_space<vmem>>, vector<128x128xf32>
    %cst = arith.constant dense<0.000000e+00> : vector<20x128xf32>
    %2 = tpu.matmul %0, %1, %cst {dimension_numbers = #tpu.dot_dimension_numbers<[1], [0], [0], [1], [0, 0, 1, 1], [], []>} : vector<20x128xf32>, vector<128x128xf32>, vector<20x128xf32> -> vector<20x128xf32>
    %3 = tpu.iota {dimensions = array<i32: 1>} : vector<20x128xi32>
    %c16_i32 = arith.constant 16 : i32
    %4 = vector.broadcast %c16_i32 : i32 to vector<20x128xi32>
    %5 = arith.cmpi slt, %3, %4 : vector<20x128xi32>
    %cst_3 = arith.constant -1.000000e+30 : f32
    %6 = vector.broadcast %cst_3 : f32 to vector<20x128xf32>
    %7 = arith.select %5, %2, %6 : vector<20x128xi1>, vector<20x128xf32>
    %cst_4 = arith.constant dense<0xFF800000> : vector<20xf32>
    %8 = vector.multi_reduction <maximumf>, %7, %cst_4 [1] : vector<20x128xf32> to vector<20xf32>
    %9 = vector.shape_cast %8 : vector<20xf32> to vector<20x1xf32>
    %10 = vector.broadcast %9 : vector<20x1xf32> to vector<20x128xf32>
    %11 = arith.subf %7, %10 : vector<20x128xf32>
    %12 = math.exp %11 : vector<20x128xf32>
    %cst_5 = arith.constant dense<0.000000e+00> : vector<20xf32>
    %13 = vector.multi_reduction <add>, %12, %cst_5 [1] : vector<20x128xf32> to vector<20xf32>
    %14 = vector.shape_cast %13 : vector<20xf32> to vector<20x1xf32>
    %c0_6 = arith.constant 0 : index
    %c0_7 = arith.constant 0 : index
    %15 = vector.load %arg3[%c0_6, %c0_7] : memref<20x1xi32, #tpu.memory_space<vmem>>, vector<20x1xi32>
    %c2_i32 = arith.constant 2 : i32
    %16 = vector.broadcast %c2_i32 : i32 to vector<20x1xi32>
    %17 = arith.muli %15, %16 : vector<20x1xi32>
    %18 = vector.broadcast %17 : vector<20x1xi32> to vector<20x128xi32>
    %19 = arith.cmpi sge, %3, %18 : vector<20x128xi32>
    %c2_i32_8 = arith.constant 2 : i32
    %20 = vector.broadcast %c2_i32_8 : i32 to vector<20x1xi32>
    %21 = arith.addi %17, %20 : vector<20x1xi32>
    %22 = vector.broadcast %21 : vector<20x1xi32> to vector<20x128xi32>
    %23 = arith.cmpi slt, %3, %22 : vector<20x128xi32>
    %24 = arith.andi %19, %23 : vector<20x128xi1>
    %cst_9 = arith.constant 0.000000e+00 : f32
    %25 = vector.broadcast %cst_9 : f32 to vector<20x128xf32>
    %26 = arith.select %24, %12, %25 : vector<20x128xi1>, vector<20x128xf32>
    %cst_10 = arith.constant dense<0.000000e+00> : vector<20xf32>
    %27 = vector.multi_reduction <add>, %26, %cst_10 [1] : vector<20x128xf32> to vector<20xf32>
    %28 = vector.shape_cast %27 : vector<20xf32> to vector<20x1xf32>
    %29 = math.log %14 : vector<20x1xf32>
    %cst_11 = arith.constant 1.000000e-30 : f32
    %30 = vector.broadcast %cst_11 : f32 to vector<20x1xf32>
    %31 = arith.maximumf %28, %30 : vector<20x1xf32>
    %32 = math.log %31 : vector<20x1xf32>
    %33 = arith.subf %29, %32 : vector<20x1xf32>
    %c0_i32 = arith.constant 0 : i32
    %34 = vector.broadcast %c0_i32 : i32 to vector<20x1xi32>
    %35 = arith.cmpi sge, %15, %34 : vector<20x1xi32>
    %cst_12 = arith.constant 0.000000e+00 : f32
    %36 = vector.broadcast %cst_12 : f32 to vector<20x1xf32>
    %37 = arith.select %35, %33, %36 : vector<20x1xi1>, vector<20x1xf32>
    %c0_13 = arith.constant 0 : index
    %c0_14 = arith.constant 0 : index
    %38 = vector.load %arg4[%c0_13, %c0_14] : memref<20x1xf32, #tpu.memory_space<vmem>>, vector<20x1xf32>
    tpu.vector_store %arg4[%c0_13, %c0_14], %37 {strides = array<i32>} : memref<20x1xf32, #tpu.memory_space<vmem>>, vector<20x1xf32>,
    return
  }
  func.func @transform_0(%arg0: i32) -> (i32, i32) {
    %c0_i32 = arith.constant 0 : i32
    %c0_i32_0 = arith.constant 0 : i32
    %c0_i32_1 = arith.constant 0 : i32
    return %c0_i32, %c0_i32_0 : i32, i32
  }
  func.func @transform_1(%arg0: i32) -> (i32, i32) {
    %c0_i32 = arith.constant 0 : i32
    %c0_i32_0 = arith.constant 0 : i32
    return %arg0, %c0_i32 : i32, i32
  }
  func.func @transform_2(%arg0: i32) -> (i32, i32) {
    %c0_i32 = arith.constant 0 : i32
    %c0_i32_0 = arith.constant 0 : i32
    return %arg0, %c0_i32 : i32, i32
  }
  func.func @transform_3(%arg0: i32) -> (i32, i32) {
    %c0_i32 = arith.constant 0 : i32
    %c0_i32_0 = arith.constant 0 : i32
    return %arg0, %c0_i32 : i32, i32
  }
}

</mosaic_0001>

<bundles_post_ra>
// kernel: tpu_custom_call.1
= control target key start
LH: loop header
LB: loop body
LE: loop exit
PB: predicated region body
PF: predicated region fallthrough
CT: control target
= control target key end

     0   :  { %8 = vsyncpa [#allocation3], 0  ;;  %s388_s12 = smov [#allocation2]   ;;  %s497_s0 = inlined_call_operand.hbm [shape: f32[128,128], index: 0, kind: input, shape index: {}]   ;;  %s498_s1 = inlined_call_operand.vmem [shape: f32[20,128], index: 1, kind: input, shape index: {}]   ;;  %s499_s2 = inlined_call_operand.vmem [shape: s32[20,1], index: 2, kind: input, shape index: {}]   ;;  %s500_s3 = inlined_call_operand.vmem [shape: f32[20,1], index: 3, kind: output, shape index: {}]  }
   0x1   :  { %s14_s13 = sshll.u32 %s388_s12, 4  ;;  %s364_s16 = scalar_lea.hbm %s497_s0, 2048  ;;  %s15_s13 = int_to_ptr.vmem [resolvable:$true] %s14_s13 }
   0x2   :  { %p365_p0 = scmp.ne.s32.totalorder %s497_s0, %s364_s16  ;;  %p368_p1 = scmp.lt.u32.totalorder %s364_s16, %s497_s0 }
   0x4   :  { %p370_p2 = pnand %p368_p1, %p365_p0 }
   0x6   :  { %373 = shalt.err (!%p370_p2)
}
   0x7   :  { %s374_s21 = scalar_lea.vmem %s15_s13, 2048  ;;  %p379_p4 = scmp.lt.s32.totalorder %s15_s13, %s15_s13 }
   0x8   :  { %p375_p3 = scmp.ne.s32.totalorder %s15_s13, %s374_s21  ;;  %p380_p5 = scmp.lt.s32.totalorder %s374_s21, %s374_s21 }
   0xa   :  { %p381_p6 = por %p380_p5, %p379_p4 }
   0xc   :  { %p382_p7 = pnand %p381_p6, %p375_p3 }
   0xe   :  { %385 = shalt.err (!%p382_p7)
}
   0xf   :  { %s389_s22 = smov 128   ;;  %s390_s23 = smov 8  }
  0x10   :  { %20 = dma.hbm_to_vmem [thread:$0]  %s497_s0, 2048, %s15_s13, [#allocation3], %s389_s22, %s389_s22, %s390_s23  }
  0x11   :  { %386 = dma.done.wait [#allocation3], 2048  }
  0x12   :  { %387 = vsyncadd [#allocation3], 4294965248  ;;  %v391_v0 = vmov 0.0|0.0   ;;  %vm392_vm0 = vmmov 0   ;;  %v393_v1 = vmov 0.0   ;;  %v394_v2 = vmov 0  }
  0x13   :  { %297 = vmatprep.subr.bf16.mxu0 %v391_v0  ;;  %321 = vmatprep.subr.bf16.mxu1 %v391_v0  ;;  %v31_v3 = vld [vmem:[#allocation2] sm:$0xff]  ;;  %v32_v4 = vld [vmem:[#allocation2 + $0x8] sm:$0xff]  ;;  %v33_v5 = vld [vmem:[#allocation2 + $0x10] sm:$0xff]  ;;  %v127_v32 = vlaneseq  ;;  %vm137_vm2 = vcmask 1043456   ;;  %vm227_vm13 = vcmask 7168   ;;  %vm230_vm15 = vcmask 3072  }
  0x14   :  { %288 = vmatprep.mubr.msk.f32.mxu0 %vm392_vm0, %v393_v1  ;;  %291 = vmatprep.mubr.msk.f32.mxu1 %vm392_vm0, %v393_v1  ;;  %v298_v6 = vpack.c.bf16 %v32_v4, %v31_v3  ;;  %v34_v7 = vld [vmem:[#allocation2 + $0x18] sm:$0xff]  ;;  %v35_v9 = vld [vmem:[#allocation2 + $0x20] sm:$0xff]  ;;  %v36_v10 = vld [vmem:[#allocation2 + $0x28] sm:$0xff] }
  0x15   :  { %344 = vset.pattern.permute.xlu1 %v394_v2  ;;  %345 = vset.pattern.permute.xlu0 %v394_v2  ;;  %v301_v8 = vpack.c.bf16 %v34_v7, %v33_v5  ;;  %v438_v11 = vld [vmem:[%s499_s2 + $0x10] sm:$0xf]  ;;  %v304_v12 = vpack.c.bf16 %v36_v10, %v35_v9  ;;  %v38_v15 = vld [vmem:[#allocation2 + $0x38] sm:$0xff]  ;;  %v39_v17 = vld [vmem:[#allocation2 + $0x40] sm:$0xff]  ;;  %v128_v33 = vand.u32 127, %v127_v32 }
  0x16   :  { %299 = vmatpush3.bf16.msra.mxu0 %v298_v6  ;;  %329 = vmatpush3.bf16.msra.mxu1 %v298_v6  ;;  %v162_v13 = vmul.u32 2, %v438_v11  ;;  %v37_v14 = vld [vmem:[#allocation2 + $0x30] sm:$0xff]  ;;  %v40_v18 = vld [vmem:[#allocation2 + $0x48] sm:$0xff]  ;;  %v42_v21 = vld [vmem:[#allocation2 + $0x58] sm:$0xff]  ;;  %vm223_vm14 = vcmp.ge.s32.totalorder %v438_v11, 0 }
  0x17   :  { %300 = vmatprep.subr.bf16.mxu0 %v391_v0  ;;  %322 = vmatprep.subr.bf16.mxu1 %v391_v0  ;;  %v307_v16 = vpack.c.bf16 %v38_v15, %v37_v14  ;;  %v310_v19 = vpack.c.bf16 %v40_v18, %v39_v17  ;;  %v41_v20 = vld [vmem:[#allocation2 + $0x50] sm:$0xff]  ;;  %v43_v23 = vld [vmem:[#allocation2 + $0x60] sm:$0xff]  ;;  %v44_v24 = vld [vmem:[#allocation2 + $0x68] sm:$0xff]  ;;  %vm129_vm1 = vcmp.lt.s32.totalorder %v128_v33, 16 }
  0x18   :  { %170 = vperm.xlu1 %344, %v162_v13   ;;  %v313_v22 = vpack.c.bf16 %v42_v21, %v41_v20  ;;  %v316_v25 = vpack.c.bf16 %v44_v24, %v43_v23  ;;  %v45_v26 = vld [vmem:[#allocation2 + $0x70] sm:$0xff]  ;;  %v46_v27 = vld [vmem:[#allocation2 + $0x78] sm:$0xff]  ;;  %v28_v29 = vld [vmem:[%s498_s1] sm:$0xff]  ;;  %v177_v49 = vadd.s32 2, %v162_v13 }
  0x19   :  { %v319_v28 = vpack.c.bf16 %v46_v27, %v45_v26  ;;  %v29_v30 = vld [vmem:[%s498_s1 + $0x8] sm:$0xff]  ;;  %v30_v31 = vld [vmem:[%s498_s1 + $0x10] sm:$0xf]  ;;  %v470_v44 = vld [vmem:[%s499_s2] sm:$0xff] }
  0x1a   :  { %302 = vmatpush3.bf16.msra.mxu0 %v301_v8  ;;  %330 = vmatpush3.bf16.msra.mxu1 %v301_v8  ;;  %v160_v45 = vmul.u32 2, %v470_v44  ;;  %v476_v46 = vld [vmem:[%s499_s2 + $0x8] sm:$0xff]  ;;  %vm221_vm12 = vcmp.ge.s32.totalorder %v470_v44, 0 }
  0x1b   :  { %303 = vmatprep.subr.bf16.mxu0 %v391_v0  ;;  %323 = vmatprep.subr.bf16.mxu1 %v391_v0  ;;  %v161_v47 = vmul.u32 2, %v476_v46 }
  0x1c   :  { %v175_v48 = vadd.s32 2, %v160_v45 }
  0x1d   :  { %v176_v50 = vadd.s32 2, %v161_v47 }
  0x1e   :  { %305 = vmatpush3.bf16.msra.mxu0 %v304_v12  ;;  %331 = vmatpush3.bf16.msra.mxu1 %v304_v12 }
  0x1f   :  { %306 = vmatprep.subr.bf16.mxu0 %v391_v0  ;;  %324 = vmatprep.subr.bf16.mxu1 %v391_v0 }
  0x22   :  { %308 = vmatpush3.bf16.msra.mxu0 %v307_v16  ;;  %332 = vmatpush3.bf16.msra.mxu1 %v307_v16 }
  0x23   :  { %309 = vmatprep.subr.bf16.mxu0 %v391_v0  ;;  %325 = vmatprep.subr.bf16.mxu1 %v391_v0 }
  0x26   :  { %311 = vmatpush3.bf16.msra.mxu0 %v310_v19  ;;  %333 = vmatpush3.bf16.msra.mxu1 %v310_v19 }
  0x27   :  { %312 = vmatprep.subr.bf16.mxu0 %v391_v0  ;;  %326 = vmatprep.subr.bf16.mxu1 %v391_v0 }
  0x2a   :  { %314 = vmatpush3.bf16.msra.mxu0 %v313_v22  ;;  %334 = vmatpush3.bf16.msra.mxu1 %v313_v22 }
  0x2b   :  { %315 = vmatprep.subr.bf16.mxu0 %v391_v0  ;;  %327 = vmatprep.subr.bf16.mxu1 %v391_v0 }
  0x2e   :  { %317 = vmatpush3.bf16.msra.mxu0 %v316_v25  ;;  %335 = vmatpush3.bf16.msra.mxu1 %v316_v25 }
  0x2f   :  { %318 = vmatprep.subr.bf16.mxu0 %v391_v0  ;;  %328 = vmatprep.subr.bf16.mxu1 %v391_v0 }
  0x32   :  { %320 = vmatpush3.bf16.msra.mxu0 %v319_v28  ;;  %336 = vmatpush3.bf16.msra.mxu1 %v319_v28 }
  0x35   :  { %289 = vmatmul.mubr.f32.vlgmr.msra.gmra.mrb[0].mxu0 %v28_v29  ;;  %292 = vmatmul.mubr.f32.vlgmr.msra.gmra.mrb[0].mxu1 %v29_v30 }
  0x36   :  { %294 = vmatprep.mubr.msk.f32.mxu1 %vm392_vm0, %v393_v1  ;;  %vm222_vm0 = vcmp.ge.s32.totalorder %v476_v46, 0 }
  0x39   :  { %295 = vmatmul.mubr.f32.gmra.mrb[2].mxu1 %v30_v31 }
  0x97   :  { %v171_v51 = vpop.permute.xlu1 %170 }
  0x98   :  { %vm174_vm10 = vcmp.ge.s32.totalorder %v128_v33, %v171_v51 }
 0x108   :  { %v113_v34 = vpop.f32.mrb[0].mxu0  ;;  %v118_v35 = vpop.f32.mrb[0].mxu1 }
 0x109   :  { %v290_v36 = vpop.f32.mrb[1].mxu0  ;;  %v293_v37 = vpop.f32.mrb[1].mxu1  ;;  %v131_v38 = vsel %vm129_vm1, %v118_v35, -1e+30  ;;  %v130_v39 = vsel %vm129_vm1, %v113_v34, -1e+30 }
 0x10a   :  { %135 = vmax.xlane.f32.xlu1 %v131_v38  ;;  %133 = vmax.xlane.f32.xlu0 %v130_v39 }
 0x10c   :  { %v123_v40 = vpop.f32.mrb[2].mxu1 }
 0x10d   :  { %v132_v41 = vsel %vm129_vm1, %v123_v40, -1e+30  ;;  %v296_v42 = vpop.f32.mrb[3].mxu1 }
 0x10e   :  { %v138_v43 = vsel %vm137_vm2, %v132_v41, -inf }
 0x10f   :  { %139 = vmax.xlane.f32.xlu0 %v138_v43 }
 0x11b   :  { %164 = vperm.xlu1 %344, %v160_v45  }
 0x11f   :  { %167 = vperm.xlu1 %344, %v161_v47  }
 0x123   :  { %179 = vperm.xlu1 %344, %v175_v48  }
 0x125   :  { %185 = vperm.xlu0 %345, %v177_v49  }
 0x127   :  { %182 = vperm.xlu1 %344, %v176_v50  }
 0x197   :  { %v136_v52 = vpop.xlane.xlu1 %135  ;;  %v134_v53 = vpop.xlane.xlu0 %133 }
 0x198   :  { %v142_v54 = vsub.f32 %v131_v38, %v136_v52  ;;  %v141_v55 = vsub.f32 %v130_v39, %v134_v53 }
 0x19a   :  { %v144_v56 = vmul.f32 1.442695, %v141_v55  ;;  %v146_v57 = vmul.f32 1.442695, %v142_v54 }
 0x19b   :  { %v165_v58 = vpop.permute.xlu1 %164 }
 0x19c   :  { %v140_v59 = vpop.xlane.xlu0 %139  ;;  %346 = vpow2.f32 %v144_v56  ;;  %vm172_vm4 = vcmp.ge.s32.totalorder %v128_v33, %v165_v58 }
 0x19d   :  { %v143_v60 = vsub.f32 %v132_v41, %v140_v59  ;;  %348 = vpow2.f32 %v146_v57 }
 0x19f   :  { %v148_v61 = vmul.f32 1.442695, %v143_v60  ;;  %v168_v62 = vpop.permute.xlu1 %167 }
 0x1a0   :  { %vm173_vm5 = vcmp.ge.s32.totalorder %v128_v33, %v168_v62 }
 0x1a1   :  { %350 = vpow2.f32 %v148_v61 }
 0x1a3   :  { %v180_v63 = vpop.permute.xlu1 %179 }
 0x1a4   :  { %vm187_vm3 = vcmp.lt.s32.totalorder %v128_v33, %v180_v63  ;;  %v186_v0 = vpop.permute.xlu0 %185 }
 0x1a5   :  { %vm189_vm6 = vcmp.lt.s32.totalorder %v128_v33, %v186_v0  ;;  %vm190_vm8 = vmand %vm172_vm4, %vm187_vm3 }
 0x1a6   :  { %v347_v1 = vpop.eup %346  ;;  %vm192_vm11 = vmand %vm174_vm10, %vm189_vm6 }
 0x1a7   :  { %v183_v2 = vpop.permute.xlu1 %182  ;;  %150 = vadd.xlane.f32.xlu1 %v347_v1  ;;  %v349_v3 = vpop.eup %348  ;;  %v193_v6 = vsel %vm190_vm8, %v347_v1, 0.0 }
 0x1a8   :  { %vm188_vm7 = vcmp.lt.s32.totalorder %v128_v33, %v183_v2 }
 0x1a9   :  { %vm191_vm9 = vmand %vm173_vm5, %vm188_vm7 }
 0x1aa   :  { %v194_v4 = vsel %vm191_vm9, %v349_v3, 0.0 }
 0x1ab   :  { %v351_v5 = vpop.eup %350  ;;  %198 = vadd.xlane.f32.xlu0 %v194_v4  ;;  %196 = vadd.xlane.f32.xlu1 %v193_v6 }
 0x1ac   :  { %v195_v7 = vsel %vm192_vm11, %v351_v5, 0.0  ;;  %v154_v9 = vsel %vm137_vm2, %v351_v5, 0.0 }
 0x1ad   :  { %v200_v8 = vsel %vm137_vm2, %v195_v7, 0.0 }
 0x1af   :  { %155 = vadd.xlane.f32.xlu0 %v154_v9  ;;  %201 = vadd.xlane.f32.xlu1 %v200_v8 }
 0x1b3   :  { %152 = vadd.xlane.f32.xlu1 %v349_v3 }
 0x234   :  { %v151_v10 = vpop.xlane.xlu1 %150 }
 0x235   :  { %352 = vlog2.f32 %v151_v10 }
 0x238   :  { %v199_v12 = vpop.xlane.xlu0 %198  ;;  %v197_v13 = vpop.xlane.xlu1 %196 }
 0x239   :  { %v209_v14 = vmax.f32 %v197_v13, 1e-30  ;;  %v210_v15 = vmax.f32 %v199_v12, 1e-30 }
 0x23b   :  { %354 = vlog2.f32 %v209_v14 }
 0x23c   :  { %v156_v16 = vpop.xlane.xlu0 %155  ;;  %v202_v17 = vpop.xlane.xlu1 %201 }
 0x23d   :  { %v211_v18 = vmax.f32 %v202_v17, 1e-30  ;;  %356 = vlog2.f32 %v156_v16 }
 0x23e   :  { %358 = vlog2.f32 %v210_v15 }
 0x23f   :  { %360 = vlog2.f32 %v211_v18  ;;  %v353_v20 = vpop.eup %352 }
 0x240   :  { %v153_v19 = vpop.xlane.xlu1 %152  ;;  %v204_v22 = vmul.f32 0.6931472, %v353_v20 }
 0x241   :  { %362 = vlog2.f32 %v153_v19 }
 0x245   :  { %v355_v21 = vpop.eup %354 }
 0x246   :  { %v213_v23 = vmul.f32 0.6931472, %v355_v21 }
 0x247   :  { %v357_v24 = vpop.eup %356 }
 0x248   :  { %v359_v25 = vpop.eup %358  ;;  %v218_v26 = vsub.f32 %v204_v22, %v213_v23  ;;  %v208_v30 = vmul.f32 0.6931472, %v357_v24 }
 0x249   :  { %v361_v27 = vpop.eup %360  ;;  %v215_v32 = vmul.f32 0.6931472, %v359_v25 }
 0x24a   :  { %v224_v28 = vsel %vm221_vm12, %v218_v26, 0.0  ;;  %v217_v29 = vmul.f32 0.6931472, %v361_v27 }
 0x24b   :  { %v363_v31 = vpop.eup %362  ;;  %228 = vst.msk [vmem:[%s500_s3] sm:$0xff] %vm227_vm13, %v224_v28 }
 0x24c   :  { %v220_v33 = vsub.f32 %v208_v30, %v217_v29  ;;  %v206_v34 = vmul.f32 0.6931472, %v363_v31 }
 0x24e   :  { %v226_v35 = vsel %vm223_vm14, %v220_v33, 0.0  ;;  %v219_v36 = vsub.f32 %v206_v34, %v215_v32 }
 0x24f   :  { %231 = vst.msk [vmem:[%s500_s3 + $0x10] sm:$0xf] %vm230_vm15, %v226_v35 }
 0x250   :  { %v225_v37 = vsel %vm222_vm0, %v219_v36, 0.0 }
 0x251   :  { %229 = vst.msk [vmem:[%s500_s3 + $0x8] sm:$0xff] %vm227_vm13, %v225_v37 }
 0x252   :  { %236 = vsyncpa [#allocation3], 1 }

</bundles_post_ra>
